<compile_context>
chip_gen: v7x
topology: tpu7x:2x2x1
jax: 0.10.0
libtpu: 0.0.40
codegen_flags: <defaults>
</compile_context>

<pallas_src>
import functools

import jax
import jax.numpy as jnp
from jax.experimental import pallas as pl
from jax.experimental.pallas import tpu as pltpu

OUT_FEATURES = 16            # fixed by the module: nn.Linear(1, 16, bias=False)
LANE = 128                   # TPU lane width
PACK = LANE // OUT_FEATURES  # 8 batch elements per 128-lane output row
DEFAULT_BLOCK_ROWS = 8192    # rows of the (B/8, 128) view per grid step
                             # = 65536 batch elements; ~8.9 MiB double-buffered


def _auto_baseline_kernel(x_ref, w_ref, o_ref):
    # x_ref: (bt, 8)    -- 8 consecutive batch scalars per row (row-major x view)
    # w_ref: (8, 128)   -- row a holds w in lanes [16a, 16a+16), zeros elsewhere
    # o_ref: (bt, 128)  -- row-major view of the (8*bt, 16) output slab
    #
    # out[r, 16a + c] = x[8r + a] * w[c]  ==  sum_a x[r, a] * w_rows[a, :]
    # Exact f32 on the VPU: each output lane gets exactly one non-zero product.
    x = x_ref[...]
    w = w_ref[...]
    terms = [x[:, a:a + 1] * w[a:a + 1, :] for a in range(PACK)]
    while len(terms) > 1:  # small balanced tree -> short dependency chain
        terms = [terms[i] + terms[i + 1] for i in range(0, len(terms), 2)]
    o_ref[...] = terms[0].astype(o_ref.dtype)


def _round_up(n, m):
    return ((n + m - 1) // m) * m


@functools.partial(jax.jit, static_argnames=("block_rows",))
def auto_baseline_forward(x, weight, *, block_rows=DEFAULT_BLOCK_ROWS):
    """x: (B, 1) float32, weight: (16, 1) float32 -> (B, 16) float32."""
    B = x.shape[0]
    assert x.shape == (B, 1)
    assert weight.shape == (OUT_FEATURES, 1)
    assert block_rows > 0 and block_rows % 8 == 0

    # Pad the batch only up to a multiple of 8 (so y's (B/8, 128) view exists);
    # never up to the tile size.
    b_pad = _round_up(B, PACK)
    x_flat = x.reshape(B)
    if b_pad != B:
        x_flat = jnp.pad(x_flat, (0, b_pad - B))
    rows = b_pad // PACK
    x_rows = x_flat.reshape(rows, PACK)  # metadata-only reshape

    # Pre-masked weight rows: w_rows[a, 16a:16a+16] = weight[:, 0], else 0.
    w_vec = weight.reshape(OUT_FEATURES).astype(x.dtype)
    w_rows = (jnp.eye(PACK, dtype=x.dtype)[:, :, None]
              * w_vec[None, None, :]).reshape(PACK, LANE)

    # Tile over the output-view rows; ragged last tile handled by Pallas.
    bt = rows if rows <= block_rows else block_rows
    grid = (pl.cdiv(rows, bt),)

    cost = pl.CostEstimate(
        flops=2 * OUT_FEATURES * b_pad,
        transcendentals=0,
        bytes_accessed=4 * b_pad + 4 * OUT_FEATURES * b_pad + 4 * PACK * LANE,
    )

    y_view = pl.pallas_call(
        _auto_baseline_kernel,
        out_shape=jax.ShapeDtypeStruct((rows, LANE), x.dtype),
        grid=grid,
        in_specs=[
            pl.BlockSpec((bt, PACK), lambda i: (i, 0)),     # x rows, lane-dense-ish
            pl.BlockSpec((PACK, LANE), lambda i: (0, 0)),   # weight table, resident
        ],
        out_specs=pl.BlockSpec((bt, LANE), lambda i: (i, 0)),  # 128-lane-dense y view
        compiler_params=pltpu.CompilerParams(
            dimension_semantics=("parallel",),
        ),
        cost_estimate=cost,
    )(x_rows, w_rows)

    y = y_view.reshape(b_pad, OUT_FEATURES)  # contiguous view: metadata only
    if b_pad != B:
        y = y[:B]                            # only copies when B % 8 != 0
    return y


def make_params(initial_baseline):
    """Mirror AutoBaselineNetwork.__init__: weight[:, 0] = initial_baseline."""
    initial_baseline = jnp.asarray(initial_baseline, dtype=jnp.float32)
    assert initial_baseline.shape == (OUT_FEATURES,)
    # nn.Linear weight layout is (out_features, in_features) = (16, 1).
    return initial_baseline.reshape(OUT_FEATURES, 1)


if __name__ == "__main__":
    key = jax.random.PRNGKey(0)
    k_base, k_x = jax.random.split(key)

    initial_baseline = jax.random.normal(k_base, (OUT_FEATURES,), dtype=jnp.float32)
    weight = make_params(initial_baseline)

    # Exact f32 reference (plain broadcast multiply, so the reference itself is
    # not bf16-truncated by an XLA matmul): y[b, o] = x[b, 0] * W[o, 0].
    def reference(xi):
        return xi * weight[:, 0][None, :]

    # Main small example, shape (B, 1).
    B = 8
    x = jax.random.normal(k_x, (B, 1), dtype=jnp.float32)
    y = jax.block_until_ready(auto_baseline_forward(x, weight))
    assert y.shape == (B, OUT_FEATURES)
    assert jnp.allclose(y, reference(x), atol=1e-6, rtol=1e-6)

    # Extra (still tiny) coverage: multi-step grid with a ragged last tile, and
    # a batch that is not a multiple of 8 (pad + slice path).
    for b_extra, blk in ((200, 8), (13, DEFAULT_BLOCK_ROWS)):
        xe = jax.random.normal(jax.random.fold_in(k_x, b_extra),
                               (b_extra, 1), dtype=jnp.float32)
        ye = jax.block_until_ready(
            auto_baseline_forward(xe, weight, block_rows=blk))
        assert ye.shape == (b_extra, OUT_FEATURES)
        assert jnp.allclose(ye, reference(xe), atol=1e-6, rtol=1e-6)

    print("KERNEL_OK")
</pallas_src>

<mosaic_0001>
module attributes {stable_mosaic.version = 11 : i64} {
  func.func @_auto_baseline_kernel(%arg0: i32, %arg1: memref<1x8xf32, #tpu.memory_space<vmem>>, %arg2: memref<8x128xf32, #tpu.memory_space<vmem>>, %arg3: memref<1x128xf32, #tpu.memory_space<vmem>>) attributes {dimension_semantics = [#tpu.dimension_semantics<parallel>], iteration_bounds = array<i64: 1>, scalar_prefetch = 0 : i64, scratch_operands = 0 : i64, tpu.core_type = #tpu.core_type<tc>, window_params = [{transform_indices = @transform_0, window_bounds = array<i64: 1, 8>}, {pipeline_mode = #tpu.pipeline_mode<synchronous>, transform_indices = @transform_1, window_bounds = array<i64: 8, 128>}, {transform_indices = @transform_2, window_bounds = array<i64: 1, 128>}]} {
    %c0 = arith.constant 0 : index
    %c0_0 = arith.constant 0 : index
    %0 = vector.load %arg1[%c0, %c0_0] : memref<1x8xf32, #tpu.memory_space<vmem>>, vector<1x8xf32>
    %c0_1 = arith.constant 0 : index
    %c0_2 = arith.constant 0 : index
    %1 = vector.load %arg2[%c0_1, %c0_2] : memref<8x128xf32, #tpu.memory_space<vmem>>, vector<8x128xf32>
    %2 = vector.extract_strided_slice %0 {offsets = [0, 0], sizes = [1, 1], strides = [1, 1]} : vector<1x8xf32> to vector<1x1xf32>
    %3 = vector.extract_strided_slice %1 {offsets = [0, 0], sizes = [1, 128], strides = [1, 1]} : vector<8x128xf32> to vector<1x128xf32>
    %4 = vector.broadcast %2 : vector<1x1xf32> to vector<1x128xf32>
    %5 = arith.mulf %4, %3 : vector<1x128xf32>
    %6 = vector.extract_strided_slice %0 {offsets = [0, 1], sizes = [1, 1], strides = [1, 1]} : vector<1x8xf32> to vector<1x1xf32>
    %7 = vector.extract_strided_slice %1 {offsets = [1, 0], sizes = [1, 128], strides = [1, 1]} : vector<8x128xf32> to vector<1x128xf32>
    %8 = vector.broadcast %6 : vector<1x1xf32> to vector<1x128xf32>
    %9 = arith.mulf %8, %7 : vector<1x128xf32>
    %10 = vector.extract_strided_slice %0 {offsets = [0, 2], sizes = [1, 1], strides = [1, 1]} : vector<1x8xf32> to vector<1x1xf32>
    %11 = vector.extract_strided_slice %1 {offsets = [2, 0], sizes = [1, 128], strides = [1, 1]} : vector<8x128xf32> to vector<1x128xf32>
    %12 = vector.broadcast %10 : vector<1x1xf32> to vector<1x128xf32>
    %13 = arith.mulf %12, %11 : vector<1x128xf32>
    %14 = vector.extract_strided_slice %0 {offsets = [0, 3], sizes = [1, 1], strides = [1, 1]} : vector<1x8xf32> to vector<1x1xf32>
    %15 = vector.extract_strided_slice %1 {offsets = [3, 0], sizes = [1, 128], strides = [1, 1]} : vector<8x128xf32> to vector<1x128xf32>
    %16 = vector.broadcast %14 : vector<1x1xf32> to vector<1x128xf32>
    %17 = arith.mulf %16, %15 : vector<1x128xf32>
    %18 = vector.extract_strided_slice %0 {offsets = [0, 4], sizes = [1, 1], strides = [1, 1]} : vector<1x8xf32> to vector<1x1xf32>
    %19 = vector.extract_strided_slice %1 {offsets = [4, 0], sizes = [1, 128], strides = [1, 1]} : vector<8x128xf32> to vector<1x128xf32>
    %20 = vector.broadcast %18 : vector<1x1xf32> to vector<1x128xf32>
    %21 = arith.mulf %20, %19 : vector<1x128xf32>
    %22 = vector.extract_strided_slice %0 {offsets = [0, 5], sizes = [1, 1], strides = [1, 1]} : vector<1x8xf32> to vector<1x1xf32>
    %23 = vector.extract_strided_slice %1 {offsets = [5, 0], sizes = [1, 128], strides = [1, 1]} : vector<8x128xf32> to vector<1x128xf32>
    %24 = vector.broadcast %22 : vector<1x1xf32> to vector<1x128xf32>
    %25 = arith.mulf %24, %23 : vector<1x128xf32>
    %26 = vector.extract_strided_slice %0 {offsets = [0, 6], sizes = [1, 1], strides = [1, 1]} : vector<1x8xf32> to vector<1x1xf32>
    %27 = vector.extract_strided_slice %1 {offsets = [6, 0], sizes = [1, 128], strides = [1, 1]} : vector<8x128xf32> to vector<1x128xf32>
    %28 = vector.broadcast %26 : vector<1x1xf32> to vector<1x128xf32>
    %29 = arith.mulf %28, %27 : vector<1x128xf32>
    %30 = vector.extract_strided_slice %0 {offsets = [0, 7], sizes = [1, 1], strides = [1, 1]} : vector<1x8xf32> to vector<1x1xf32>
    %31 = vector.extract_strided_slice %1 {offsets = [7, 0], sizes = [1, 128], strides = [1, 1]} : vector<8x128xf32> to vector<1x128xf32>
    %32 = vector.broadcast %30 : vector<1x1xf32> to vector<1x128xf32>
    %33 = arith.mulf %32, %31 : vector<1x128xf32>
    %34 = arith.addf %5, %9 : vector<1x128xf32>
    %35 = arith.addf %13, %17 : vector<1x128xf32>
    %36 = arith.addf %21, %25 : vector<1x128xf32>
    %37 = arith.addf %29, %33 : vector<1x128xf32>
    %38 = arith.addf %34, %35 : vector<1x128xf32>
    %39 = arith.addf %36, %37 : vector<1x128xf32>
    %40 = arith.addf %38, %39 : vector<1x128xf32>
    %c0_3 = arith.constant 0 : index
    %c0_4 = arith.constant 0 : index
    %41 = vector.load %arg3[%c0_3, %c0_4] : memref<1x128xf32, #tpu.memory_space<vmem>>, vector<1x128xf32>
    tpu.vector_store %arg3[%c0_3, %c0_4], %40 {strides = array<i32>} : memref<1x128xf32, #tpu.memory_space<vmem>>, vector<1x128xf32>,
    return
  }
  func.func @transform_0(%arg0: i32) -> (i32, i32) {
    %c0_i32 = arith.constant 0 : i32
    %c0_i32_0 = arith.constant 0 : i32
    return %arg0, %c0_i32 : i32, i32
  }
  func.func @transform_1(%arg0: i32) -> (i32, i32) {
    %c0_i32 = arith.constant 0 : i32
    %c0_i32_0 = arith.constant 0 : i32
    %c0_i32_1 = arith.constant 0 : i32
    return %c0_i32, %c0_i32_0 : i32, i32
  }
  func.func @transform_2(%arg0: i32) -> (i32, i32) {
    %c0_i32 = arith.constant 0 : i32
    %c0_i32_0 = arith.constant 0 : i32
    return %arg0, %c0_i32 : i32, i32
  }
}

</mosaic_0001>

<bundles_post_ra>
// kernel: auto_baseline_forward.1
= control target key start
LH: loop header
LB: loop body
LE: loop exit
PB: predicated region body
PF: predicated region fallthrough
CT: control target
= control target key end

     0   :  { %v136_v0 = vmov 5   ;;  %v137_v2 = vmov 7   ;;  %v138_v3 = vmov 6   ;;  %v139_v4 = vmov 3   ;;  %s168_s0 = inlined_call_operand.vmem [shape: f32[1,8], index: 0, kind: input, shape index: {}]   ;;  %s169_s1 = inlined_call_operand.vmem [shape: f32[8,128], index: 1, kind: input, shape index: {}]   ;;  %s170_s2 = inlined_call_operand.vmem [shape: f32[1,128], index: 2, kind: output, shape index: {}]  }
   0x1   :  { %129 = vset.pattern.permute.xlu1 %v136_v0  ;;  %v11_v1 = vld [vmem:[%s168_s0] sm:$0x1]  ;;  %127 = vset.pattern.permute.xlu0 %v137_v2  ;;  %v140_v5 = vmov 1   ;;  %v141_v6 = vmov 2   ;;  %v142_v7 = vmov 4   ;;  %v143_v8 = vmov 0  }
   0x2   :  { %60 = vperm.xlu1 %129, %v11_v1   ;;  %78 = vperm.xlu0 %127, %v11_v1   ;;  %v18_v9 = vlaneseq  ;;  %v12_v17 = vld [vmem:[%s169_s1] sm:$0xff] }
   0x4   :  { %v19_v10 = vshrl.u32 %v18_v9, 7 }
   0x6   :  { %130 = vset.pattern.permute.xlu1 %v138_v3  ;;  %128 = vset.pattern.permute.xlu0 %v139_v4  ;;  %v20_v13 = vsub.s32 0, %v19_v10 }
   0x7   :  { %69 = vperm.xlu1 %130, %v11_v1   ;;  %42 = vperm.xlu0 %128, %v11_v1  }
   0xb   :  { %131 = vset.pattern.permute.xlu1 %v140_v5  ;;  %132 = vset.pattern.permute.xlu0 %v141_v6 }
   0xc   :  { %24 = vperm.xlu1 %131, %v11_v1   ;;  %33 = vperm.xlu0 %132, %v11_v1  }
  0x10   :  { %133 = vset.pattern.permute.xlu1 %v142_v7  ;;  %135 = vset.pattern.permute.xlu0 %v137_v2 }
  0x11   :  { %51 = vperm.xlu1 %133, %v11_v1  }
  0x15   :  { %134 = vset.pattern.permute.xlu1 %v143_v8 }
  0x16   :  { %15 = vperm.xlu1 %134, %v11_v1  }
  0x81   :  { %v61_v11 = vpop.permute.xlu1 %60  ;;  %v79_v12 = vpop.permute.xlu0 %78 }
  0x82   :  { %v84_v14 = vrot.slane %v79_v12, %v20_v13  ;;  %v66_v21 = vrot.slane %v61_v11, %v20_v13 }
  0x84   :  { %v85_v18 = vmul.f32 %v84_v14, %v12_v17  ;;  %v67_v28 = vmul.f32 %v66_v21, %v12_v17 }
  0x86   :  { %v70_v15 = vpop.permute.xlu1 %69  ;;  %v43_v16 = vpop.permute.xlu0 %42  ;;  %v99_v24 = vrot.slane %v85_v18, 1  ;;  %v95_v35 = vrot.slane %v67_v28, 1 }
  0x87   :  { %v75_v19 = vrot.slane %v70_v15, %v20_v13  ;;  %v48_v20 = vrot.slane %v43_v16, %v20_v13 }
  0x89   :  { %v76_v25 = vmul.f32 %v75_v19, %v12_v17  ;;  %v49_v26 = vmul.f32 %v48_v20, %v12_v17 }
  0x8b   :  { %v25_v22 = vpop.permute.xlu1 %24  ;;  %v34_v23 = vpop.permute.xlu0 %33  ;;  %v101_v32 = vadd.f32 %v99_v24, %v76_v25  ;;  %v91_v33 = vrot.slane %v49_v26, 1 }
  0x8c   :  { %v39_v27 = vrot.slane %v34_v23, %v20_v13  ;;  %v30_v29 = vrot.slane %v25_v22, %v20_v13 }
  0x8d   :  { %v107_v40 = vrot.slane %v101_v32, 2 }
  0x8e   :  { %v40_v34 = vmul.f32 %v39_v27, %v12_v17  ;;  %v31_v37 = vmul.f32 %v30_v29, %v12_v17 }
  0x90   :  { %v52_v30 = vpop.permute.xlu1 %51  ;;  %v93_v41 = vadd.f32 %v91_v33, %v40_v34  ;;  %v87_v43 = vrot.slane %v31_v37, 1 }
  0x91   :  { %v57_v31 = vrot.slane %v52_v30, %v20_v13 }
  0x92   :  { %v103_v46 = vrot.slane %v93_v41, 2 }
  0x93   :  { %v58_v36 = vmul.f32 %v57_v31, %v12_v17 }
  0x95   :  { %v97_v38 = vadd.f32 %v95_v35, %v58_v36  ;;  %v16_v39 = vpop.permute.xlu1 %15 }
  0x96   :  { %v21_v42 = vrot.slane %v16_v39, %v20_v13 }
  0x97   :  { %v109_v44 = vadd.f32 %v107_v40, %v97_v38 }
  0x98   :  { %v22_v45 = vmul.f32 %v21_v42, %v12_v17 }
  0x99   :  { %v111_v48 = vrot.slane %v109_v44, 4 }
  0x9a   :  { %v89_v47 = vadd.f32 %v87_v43, %v22_v45 }
  0x9c   :  { %v105_v49 = vadd.f32 %v103_v46, %v89_v47 }
  0x9e   :  { %v113_v50 = vadd.f32 %v111_v48, %v105_v49 }
  0xa0   :  { %114 = vst [vmem:[%s170_s2] sm:$0x1] %v113_v50 }

</bundles_post_ra>
